<compile_context>
chip_gen: v7x
topology: tpu7x:2x2x1
jax: 0.10.0
libtpu: 0.0.40
codegen_flags: <defaults>
</compile_context>

<pallas_src>
import jax
import jax.numpy as jnp
from jax.experimental import pallas as pl
from jax.experimental.pallas import tpu as pltpu

EPS = 1e-5  # nn.BatchNorm1d default eps
_VMEM_LIMIT = 32 * 1024 * 1024      # safe on v5e/v6e (128 MiB) and v7x (64 MiB)
_BLOCK_BYTE_BUDGET = 2 * 1024 * 1024  # target bytes per x block (85%+ roofline)


def _round_up(v, m):
    return ((v + m - 1) // m) * m


# --------------------------------------------------------------------------
# Phase 1: per-feature masked sum and sum-of-squares (f32 accumulation).
# grid = (D_tiles, R_tiles); row axis is the reduction -> accumulator outputs.
# --------------------------------------------------------------------------
def _stats_kernel(x_ref, m_ref, sum_ref, sq_ref):
    # x_ref: (TR, TD), m_ref: (TR, 1) f32 {0,1}, sum_ref/sq_ref: (1, TD) f32
    @pl.when(pl.program_id(1) == 0)
    def _():
        sum_ref[...] = jnp.zeros_like(sum_ref)
        sq_ref[...] = jnp.zeros_like(sq_ref)

    x = x_ref[...].astype(jnp.float32)   # accumulate in f32 for accuracy
    m = m_ref[...]                       # (TR, 1), already f32 0/1
    xm = x * m
    sum_ref[...] += jnp.sum(xm, axis=0, keepdims=True)
    sq_ref[...] += jnp.sum(xm * x, axis=0, keepdims=True)


# --------------------------------------------------------------------------
# Phase 2: normalize with pre-folded f32 scale/shift; masked rows only.
# grid = (D_tiles, R_tiles); both axes fully parallel.
# --------------------------------------------------------------------------
def _normalize_kernel(x_ref, m_ref, scale_ref, shift_ref, o_ref):
    # x_ref/o_ref: (TR, TD) input dtype; scale/shift: (1, TD) f32
    x = x_ref[...]
    sel = m_ref[...] != 0.0                                    # compare per tile
    y = x.astype(jnp.float32) * scale_ref[...] + shift_ref[...]  # mul + add (f32)
    o_ref[...] = jnp.where(sel, y.astype(o_ref.dtype), x)       # masked_scatter


def masked_batch_norm_1d(x, mask, weight, bias, eps=EPS):
    """x: (b, t, d) float; mask: (b, t) bool or None; weight/bias: (d,)."""
    b, t, d = x.shape
    r = b * t
    dtype = x.dtype
    itemsize = jnp.dtype(dtype).itemsize

    # ---------------- tiling / padding (lane-dense, sublane-aligned) --------
    dp = _round_up(d, 128)                       # lane-dense feature dim
    td = dp if dp <= 1024 else 512               # feature tile, multiple of 128
    dp = _round_up(dp, td)                       # grid must cover every column
    nd = dp // td

    # row tile: ~2 MiB x blocks (larger tiles -> better HBM roofline), but at
    # least 512 rows, at most 1024, and shrunk (16-aligned) for tiny inputs.
    tr_cap = min(1024, max(512, _BLOCK_BYTE_BUDGET // max(td * itemsize, 1)))
    tr = tr_cap if r >= tr_cap else _round_up(max(r, 8), 16)
    rp = _round_up(r, tr)
    nr = rp // tr

    x2 = x.reshape(r, d)
    m1 = (jnp.ones((r,), jnp.float32) if mask is None
          else mask.reshape(r).astype(jnp.float32))

    xp = x2 if (rp == r and dp == d) else jnp.pad(x2, ((0, rp - r), (0, dp - d)))
    # padded tail rows carry mask = 0 so they never enter n / mean / var
    mp = (m1 if rp == r else jnp.pad(m1, (0, rp - r))).reshape(rp, 1)

    # ---------------- phase 1: masked per-feature statistics ----------------
    s_sum, s_sq = pl.pallas_call(
        _stats_kernel,
        out_shape=(jax.ShapeDtypeStruct((1, dp), jnp.float32),
                   jax.ShapeDtypeStruct((1, dp), jnp.float32)),
        grid=(nd, nr),
        in_specs=[
            pl.BlockSpec((tr, td), lambda j, i: (i, j)),
            pl.BlockSpec((tr, 1), lambda j, i: (i, 0)),
        ],
        out_specs=(
            pl.BlockSpec((1, td), lambda j, i: (0, j)),
            pl.BlockSpec((1, td), lambda j, i: (0, j)),
        ),
        compiler_params=pltpu.CompilerParams(
            dimension_semantics=("parallel", "arbitrary"),
            vmem_limit_bytes=_VMEM_LIMIT),
        cost_estimate=pl.CostEstimate(
            flops=4 * rp * dp,
            transcendentals=0,
            bytes_accessed=rp * dp * itemsize + nd * rp * 4 + 2 * dp * 4),
    )(xp, mp)

    # ---------------- tiny (1, D) math: fold scale / shift ------------------
    n = jnp.maximum(jnp.sum(mp), 1.0)                        # guard n == 0
    mean = s_sum / n
    var = jnp.maximum(s_sq / n - mean * mean, 0.0)           # guard cancellation
    inv_std = jax.lax.rsqrt(var + eps)

    wp = jnp.pad(weight.astype(jnp.float32), (0, dp - d), constant_values=1.0)
    bp = jnp.pad(bias.astype(jnp.float32), (0, dp - d))
    scale = inv_std * wp.reshape(1, dp)                      # (1, dp) f32
    shift = bp.reshape(1, dp) - mean * scale                 # (1, dp) f32

    # ---------------- phase 2: normalize + masked scatter -------------------
    out = pl.pallas_call(
        _normalize_kernel,
        out_shape=jax.ShapeDtypeStruct((rp, dp), dtype),
        grid=(nd, nr),
        in_specs=[
            pl.BlockSpec((tr, td), lambda j, i: (i, j)),
            pl.BlockSpec((tr, 1), lambda j, i: (i, 0)),
            pl.BlockSpec((1, td), lambda j, i: (0, j)),
            pl.BlockSpec((1, td), lambda j, i: (0, j)),
        ],
        out_specs=pl.BlockSpec((tr, td), lambda j, i: (i, j)),
        compiler_params=pltpu.CompilerParams(
            dimension_semantics=("parallel", "parallel"),
            vmem_limit_bytes=_VMEM_LIMIT),
        cost_estimate=pl.CostEstimate(
            flops=2 * rp * dp,
            transcendentals=0,
            bytes_accessed=2 * rp * dp * itemsize + nd * rp * 4 + 2 * dp * 4),
    )(xp, mp, scale, shift)

    return out[:r, :d].reshape(b, t, d)


def _reference(x, mask, weight, bias):
    """Pure-JAX reference reproducing the PyTorch semantics."""
    b, t, d = x.shape
    m = jnp.ones((b, t), bool) if mask is None else mask
    mf = m.astype(jnp.float32)[..., None]          # (b, t, 1)
    n = jnp.sum(mf)
    mean = jnp.sum(x * mf, axis=(0, 1)) / n
    var = jnp.sum((x * x) * mf, axis=(0, 1)) / n - mean * mean
    y = (x - mean) / jnp.sqrt(var + EPS) * weight + bias
    return jnp.where(m[..., None], y, x)


if __name__ == "__main__":
    key = jax.random.PRNGKey(0)
    k_x, k_m, k_w, k_b = jax.random.split(key, 4)

    b, t, d = 2, 8, 32
    x = jax.random.normal(k_x, (b, t, d), dtype=jnp.float32)
    mask = jax.random.uniform(k_m, (b, t)) > 0.3          # boolean mask (b, t)
    # Deterministic synthetic BatchNorm1d affine parameters (shape (d,) each).
    weight = 1.0 + 0.1 * jax.random.normal(k_w, (d,), dtype=jnp.float32)
    bias = 0.1 * jax.random.normal(k_b, (d,), dtype=jnp.float32)

    out = jax.block_until_ready(masked_batch_norm_1d(x, mask, weight, bias))
    ref = _reference(x, mask, weight, bias)
    assert out.shape == (b, t, d)
    assert jnp.allclose(out, ref, atol=1e-4, rtol=1e-4)

    # Also exercise the mask=None path (all rows normalized).
    out_nomask = jax.block_until_ready(masked_batch_norm_1d(x, None, weight, bias))
    ref_nomask = _reference(x, None, weight, bias)
    assert jnp.allclose(out_nomask, ref_nomask, atol=1e-4, rtol=1e-4)

    print("KERNEL_OK")
</pallas_src>

<mosaic_0001>
module attributes {stable_mosaic.version = 11 : i64} {
  func.func @_stats_kernel(%arg0: i32, %arg1: i32, %arg2: memref<16x128xf32, #tpu.memory_space<vmem>>, %arg3: memref<16x1xf32, #tpu.memory_space<vmem>>, %arg4: memref<1x128xf32, #tpu.memory_space<vmem>>, %arg5: memref<1x128xf32, #tpu.memory_space<vmem>>) attributes {dimension_semantics = [#tpu.dimension_semantics<parallel>, #tpu.dimension_semantics<arbitrary>], iteration_bounds = array<i64: 1, 1>, scalar_prefetch = 0 : i64, scratch_operands = 0 : i64, tpu.core_type = #tpu.core_type<tc>, window_params = [{transform_indices = @transform_0, window_bounds = array<i64: 16, 128>}, {transform_indices = @transform_1, window_bounds = array<i64: 16, 1>}, {transform_indices = @transform_2, window_bounds = array<i64: 1, 128>}, {transform_indices = @transform_3, window_bounds = array<i64: 1, 128>}]} {
    %c0_i32 = arith.constant 0 : i32
    %0 = arith.cmpi eq, %arg1, %c0_i32 : i32
    %1 = arith.extui %0 : i1 to i32
    %c0_i32_0 = arith.constant 0 : i32
    %2 = arith.cmpi ne, %1, %c0_i32_0 : i32
    scf.if %2 {
      %cst_13 = arith.constant 0.000000e+00 : f32
      %18 = vector.broadcast %cst_13 : f32 to vector<1x128xf32>
      %c0_14 = arith.constant 0 : index
      %c0_15 = arith.constant 0 : index
      %19 = vector.load %arg4[%c0_14, %c0_15] : memref<1x128xf32, #tpu.memory_space<vmem>>, vector<1x128xf32>
      tpu.vector_store %arg4[%c0_14, %c0_15], %18 {strides = array<i32>} : memref<1x128xf32, #tpu.memory_space<vmem>>, vector<1x128xf32>,
      %cst_16 = arith.constant 0.000000e+00 : f32
      %20 = vector.broadcast %cst_16 : f32 to vector<1x128xf32>
      %c0_17 = arith.constant 0 : index
      %c0_18 = arith.constant 0 : index
      %21 = vector.load %arg5[%c0_17, %c0_18] : memref<1x128xf32, #tpu.memory_space<vmem>>, vector<1x128xf32>
      tpu.vector_store %arg5[%c0_17, %c0_18], %20 {strides = array<i32>} : memref<1x128xf32, #tpu.memory_space<vmem>>, vector<1x128xf32>,
    } else {
    }
    %c0 = arith.constant 0 : index
    %c0_1 = arith.constant 0 : index
    %3 = vector.load %arg2[%c0, %c0_1] : memref<16x128xf32, #tpu.memory_space<vmem>>, vector<16x128xf32>
    %c0_2 = arith.constant 0 : index
    %c0_3 = arith.constant 0 : index
    %4 = vector.load %arg3[%c0_2, %c0_3] : memref<16x1xf32, #tpu.memory_space<vmem>>, vector<16x1xf32>
    %5 = vector.broadcast %4 : vector<16x1xf32> to vector<16x128xf32>
    %6 = arith.mulf %3, %5 : vector<16x128xf32>
    %c0_4 = arith.constant 0 : index
    %c0_5 = arith.constant 0 : index
    %7 = vector.load %arg4[%c0_4, %c0_5] : memref<1x128xf32, #tpu.memory_space<vmem>>, vector<1x128xf32>
    %cst = arith.constant dense<0.000000e+00> : vector<128xf32>
    %8 = vector.multi_reduction <add>, %6, %cst [0] : vector<16x128xf32> to vector<128xf32>
    %9 = vector.shape_cast %8 : vector<128xf32> to vector<1x128xf32>
    %10 = arith.addf %7, %9 : vector<1x128xf32>
    %c0_6 = arith.constant 0 : index
    %c0_7 = arith.constant 0 : index
    %11 = vector.load %arg4[%c0_6, %c0_7] : memref<1x128xf32, #tpu.memory_space<vmem>>, vector<1x128xf32>
    tpu.vector_store %arg4[%c0_6, %c0_7], %10 {strides = array<i32>} : memref<1x128xf32, #tpu.memory_space<vmem>>, vector<1x128xf32>,
    %c0_8 = arith.constant 0 : index
    %c0_9 = arith.constant 0 : index
    %12 = vector.load %arg5[%c0_8, %c0_9] : memref<1x128xf32, #tpu.memory_space<vmem>>, vector<1x128xf32>
    %13 = arith.mulf %6, %3 : vector<16x128xf32>
    %cst_10 = arith.constant dense<0.000000e+00> : vector<128xf32>
    %14 = vector.multi_reduction <add>, %13, %cst_10 [0] : vector<16x128xf32> to vector<128xf32>
    %15 = vector.shape_cast %14 : vector<128xf32> to vector<1x128xf32>
    %16 = arith.addf %12, %15 : vector<1x128xf32>
    %c0_11 = arith.constant 0 : index
    %c0_12 = arith.constant 0 : index
    %17 = vector.load %arg5[%c0_11, %c0_12] : memref<1x128xf32, #tpu.memory_space<vmem>>, vector<1x128xf32>
    tpu.vector_store %arg5[%c0_11, %c0_12], %16 {strides = array<i32>} : memref<1x128xf32, #tpu.memory_space<vmem>>, vector<1x128xf32>,
    return
  }
  func.func @transform_0(%arg0: i32, %arg1: i32) -> (i32, i32) {
    %c0_i32 = arith.constant 0 : i32
    return %arg1, %arg0 : i32, i32
  }
  func.func @transform_1(%arg0: i32, %arg1: i32) -> (i32, i32) {
    %c0_i32 = arith.constant 0 : i32
    %c0_i32_0 = arith.constant 0 : i32
    return %arg1, %c0_i32 : i32, i32
  }
  func.func @transform_2(%arg0: i32, %arg1: i32) -> (i32, i32) {
    %c0_i32 = arith.constant 0 : i32
    %c0_i32_0 = arith.constant 0 : i32
    return %c0_i32, %arg0 : i32, i32
  }
  func.func @transform_3(%arg0: i32, %arg1: i32) -> (i32, i32) {
    %c0_i32 = arith.constant 0 : i32
    %c0_i32_0 = arith.constant 0 : i32
    return %c0_i32, %arg0 : i32, i32
  }
}

</mosaic_0001>

<bundles_post_ra>
// kernel: tpu_custom_call.1
= control target key start
LH: loop header
LB: loop body
LE: loop exit
PB: predicated region body
PF: predicated region fallthrough
CT: control target
= control target key end

     0   :  { %9 = vsyncpa [#allocation3], 0  ;;  %s208_s0 = inlined_call_operand.vmem [shape: f32[16,128], index: 0, kind: input, shape index: {}]   ;;  %s209_s1 = inlined_call_operand.vmem [shape: f32[16,1], index: 1, kind: input, shape index: {}]   ;;  %s210_s2 = inlined_call_operand.hbm [shape: f32[1,128], index: 2, kind: output, shape index: {0}]   ;;  %s211_s3 = inlined_call_operand.hbm [shape: f32[1,128], index: 3, kind: output, shape index: {1}]  }
   0x1   :  { %v23_v0 = vld [vmem:[%s209_s1] sm:$0xff] }
   0x2   :  { %10 = vsyncpa [#allocation5], 0  ;;  %v140_v1 = vmov 0   ;;  %v24_v2 = vld [vmem:[%s209_s1 + $0x8] sm:$0xff]  ;;  %v141_v3 = vmov 0.0   ;;  %v21_v5 = vld [vmem:[%s208_s0] sm:$0xff] }
   0x3   :  { %91 = vset.pattern.permute.xlu0 %v140_v1  ;;  %19 = vst [vmem:[#allocation2] sm:$0x1] %v141_v3  ;;  %20 = vst [vmem:[#allocation4] sm:$0x1] %v141_v3  ;;  %v22_v6 = vld [vmem:[%s208_s0 + $0x8] sm:$0xff]  ;;  %s142_s1 = smov [#allocation2]  }
   0x4   :  { %27 = vperm.xlu0 %91, %v23_v0   ;;  %s65_s20 = sshll.u32 %s142_s1, 4  ;;  %s143_s0 = smov [#allocation4]   ;;  %s66_s20 = int_to_ptr.vmem [resolvable:$true] %s65_s20 }
   0x5   :  { %s75_s21 = sshll.u32 %s143_s0, 4  ;;  %s92_s22 = scalar_lea.vmem %s66_s20, 16  ;;  %s176_s21 = int_to_ptr.vmem [resolvable:$true] %s75_s21 }
   0x6   :  { %p93_p0 = scmp.ne.s32.totalorder %s66_s20, %s92_s22  ;;  %s96_s23 = scalar_lea.vmem %s66_s20, 32 }
   0x7   :  { %p97_p1 = scmp.lt.s32.totalorder %s66_s20, %s66_s20  ;;  %p98_p2 = scmp.lt.s32.totalorder %s96_s23, %s92_s22 }
   0x8   :  { %32 = vperm.xlu0 %91, %v24_v2  }
   0x9   :  { %p99_p3 = por %p98_p2, %p97_p1 }
   0xa   :  { %v37_v23 = vld [vmem:[#allocation2] sm:$0x1]  ;;  %v47_v26 = vld [vmem:[#allocation4] sm:$0x1] }
   0xb   :  { %p100_p4 = pnand %p99_p3, %p93_p0 }
  0x83   :  { %v28_v4 = vpop.permute.xlu0 %27 }
  0x84   :  { %v35_v7 = vmul.f32 %v28_v4, %v21_v5 }
  0x86   :  { %v48_v10 = vmul.f32 %v35_v7, %v21_v5 }
  0x87   :  { %v33_v8 = vpop.permute.xlu0 %32 }
  0x88   :  { %v36_v9 = vmul.f32 %v33_v8, %v22_v6 }
  0x8a   :  { %v38_v11 = vadd.f32 %v36_v9, %v35_v7  ;;  %v49_v12 = vmul.f32 %v36_v9, %v22_v6 }
  0x8c   :  { %v39_v13 = vrot.slane %v38_v11, 4  ;;  %v50_v14 = vadd.f32 %v49_v12, %v48_v10 }
  0x8e   :  { %v40_v15 = vadd.f32 %v39_v13, %v38_v11  ;;  %v51_v16 = vrot.slane %v50_v14, 4 }
  0x90   :  { %v41_v17 = vrot.slane %v40_v15, 2  ;;  %v52_v18 = vadd.f32 %v51_v16, %v50_v14 }
  0x92   :  { %v42_v19 = vadd.f32 %v41_v17, %v40_v15  ;;  %v53_v20 = vrot.slane %v52_v18, 2 }
  0x94   :  { %v54_v21 = vadd.f32 %v53_v20, %v52_v18  ;;  %v43_v22 = vrot.slane %v42_v19, 1 }
  0x96   :  { %v44_v24 = vadd.f32 %v43_v22, %v42_v19  ;;  %v55_v25 = vrot.slane %v54_v21, 1 }
  0x98   :  { %v45_v27 = vadd.f32 %v44_v24, %v37_v23  ;;  %v56_v28 = vadd.f32 %v55_v25, %v54_v21 }
  0x9a   :  { %46 = vst [vmem:[#allocation2] sm:$0x1] %v45_v27  ;;  %v57_v29 = vadd.f32 %v56_v28, %v47_v26 }
  0x9b   :  { %103 = shalt.err (!%p100_p4)
}
  0x9c   :  { %s104_s26 = scalar_lea.hbm %s210_s2, 16 }
  0x9d   :  { %p105_p5 = scmp.ne.s32.totalorder %s210_s2, %s104_s26  ;;  %p108_p6 = scmp.lt.u32.totalorder %s104_s26, %s210_s2 }
  0x9f   :  { %p110_p7 = pnand %p108_p6, %p105_p5 }
  0xa1   :  { %113 = shalt.err (!%p110_p7)
}
  0xa2   :  { %68 = dma.vmem_to_hbm [thread:$0]  %s66_s20, 16, %s210_s2, [#allocation3]   ;;  %58 = vst [vmem:[#allocation4] sm:$0x1] %v57_v29 }
  0xa3   :  { %s114_s6 = scalar_lea.vmem %s176_s21, 16  ;;  %s118_s7 = scalar_lea.vmem %s176_s21, 32 }
  0xa4   :  { %p115_p8 = scmp.ne.s32.totalorder %s176_s21, %s114_s6  ;;  %p119_p9 = scmp.lt.s32.totalorder %s176_s21, %s176_s21 }
  0xa5   :  { %p120_p10 = scmp.lt.s32.totalorder %s118_s7, %s114_s6 }
  0xa7   :  { %p121_p11 = por %p120_p10, %p119_p9 }
  0xa9   :  { %p122_p12 = pnand %p121_p11, %p115_p8 }
  0xab   :  { %125 = shalt.err (!%p122_p12)
}
  0xac   :  { %s126_s10 = scalar_lea.hbm %s211_s3, 16 }
  0xad   :  { %p127_p13 = scmp.ne.s32.totalorder %s211_s3, %s126_s10  ;;  %p130_p0 = scmp.lt.u32.totalorder %s126_s10, %s211_s3 }
  0xaf   :  { %p132_p1 = pnand %p130_p0, %p127_p13 }
  0xb1   :  { %135 = shalt.err (!%p132_p1)
}
  0xb2   :  { %78 = dma.vmem_to_hbm [thread:$0]  %s176_s21, 16, %s211_s3, [#allocation5]  }
  0xb3   :  { %136 = dma.done.wait [#allocation3], 16  }
  0xb4   :  { %137 = vsyncadd [#allocation3], 4294967280 }
  0xb5   :  { %138 = dma.done.wait [#allocation5], 16  }
  0xb6   :  { %139 = vsyncadd [#allocation5], 4294967280 }
  0xb7   :  { %85 = vsyncpa [#allocation3], 1 }
  0xb8   :  { %86 = vsyncpa [#allocation5], 1 }

</bundles_post_ra>
